<compile_context>
chip_gen: v6e
topology: v6e:2x2x1
jax: 0.10.0
libtpu: 0.0.40
codegen_flags: <defaults>
</compile_context>

<pallas_src>
import jax
import jax.numpy as jnp
from jax import lax
from jax.experimental import pallas as pl
from jax.experimental.pallas import tpu as pltpu


def _mtce_kernel(x_ref, tgt_ref, o_ref, acc_ref):
    ti = pl.program_id(1)
    bn, tt, c = x_ref.shape  # block is (BN, TT, C)

    @pl.when(ti == 0)
    def _init():
        acc_ref[...] = jnp.zeros_like(acc_ref)

    x = x_ref[...].astype(jnp.float32)                                  # (BN, TT, C)

    # Row-wise logsumexp over the class (lane) axis; lsm itself is never formed.
    m = jnp.max(x, axis=-1, keepdims=True)                              # (BN, TT, 1)
    lse = jnp.log(jnp.sum(jnp.exp(x - m), axis=-1, keepdims=True)) + m  # (BN, TT, 1)

    # One-hot selection: element (b, t, j) is picked iff global_t == target[b, j].
    tgt = tgt_ref[...]                                                  # (BN, 1, C)
    t_idx = lax.broadcasted_iota(jnp.int32, (tt, c), 0) + ti * tt       # (TT, C)
    onehot = t_idx[None, :, :] == tgt                                   # (BN, TT, C)

    row_pick = jnp.sum(jnp.where(onehot, x, 0.0), axis=-1, keepdims=True)   # (BN, TT, 1)
    row_cnt = jnp.sum(onehot.astype(jnp.float32), axis=-1, keepdims=True)   # (BN, TT, 1)

    # Per-row partial of sum(lsm[selected]) for this tile; reduce only at the end.
    acc_ref[...] += (row_pick - row_cnt * lse)[..., 0]                  # (BN, TT)

    @pl.when(ti == pl.num_programs(1) - 1)
    def _fin():
        o_ref[...] = jnp.sum(acc_ref[...], keepdims=True)               # (1, 1)


def _vmem_capacity_bytes():
    """Physical VMEM per core; conservative 64 MiB (v7x) fallback."""
    try:
        info = pltpu.get_tpu_info()
        for name in ("vmem_capacity_bytes", "vmem_size_bytes", "vmem_bytes"):
            cap = getattr(info, name, None)
            if cap:
                return int(cap)
    except Exception:
        pass
    return 64 * 1024 * 1024


def _largest_divisor_leq(n, cap):
    cap = max(1, min(cap, n))
    best, d = 1, 1
    while d * d <= n:
        if n % d == 0:
            if d <= cap and d > best:
                best = d
            q = n // d
            if q <= cap and q > best:
                best = q
        d += 1
    return best


def _choose_tiles(N, T, C, itemsize, budget_bytes):
    """Pick (BN, TT) so one x block is as large as the budget allows.

    TT is a dtype-aligned divisor of T (or full T); BN is a divisor of N.
    """
    row_align = {4: 8, 2: 16, 1: 32}.get(itemsize, 8)
    rows_budget = max(1, budget_bytes // max(1, C * itemsize))
    if T <= rows_budget:
        tt = T
        bn = _largest_divisor_leq(N, rows_budget // T)
    else:
        bn = 1
        tt = None
        t = (rows_budget // row_align) * row_align
        while t >= row_align:
            if T % t == 0:
                tt = t
                break
            t -= row_align
        if tt is None:
            # No aligned divisor of T fits the budget; fall back to a full-T
            # block (always layout-legal). The VMEM limit below grows to cover it.
            tt = T
    return bn, tt


def multi_target_cross_entropy(x, target, *, block_bytes=None):
    """x: (N, T, C) float, target: (N, T) int with values in [0, T). Requires T == C."""
    N, T, C = x.shape
    assert target.shape == (N, T)
    assert T == C, "PyTorch NLLLoss shape check requires T == C for this module"

    itemsize = jnp.dtype(x.dtype).itemsize
    vmem_cap = _vmem_capacity_bytes()
    if block_bytes is None:
        # Double-buffered x (2 x block) lands around 62% of physical VMEM.
        block_bytes = (vmem_cap * 5) // 16

    bn, tt = _choose_tiles(N, T, C, itemsize, block_bytes)
    grid = (N // bn, T // tt)

    tgt3 = target.astype(jnp.int32).reshape(N, 1, T)

    # VMEM footprint estimate (double-buffered x & target blocks + acc scratch).
    def _rup(v, m):
        return -(-v // m) * m

    x_blk = bn * tt * C * itemsize
    tgt_blk = bn * 8 * _rup(T, 128) * 4
    acc_pad = max(bn, 8) * _rup(tt, 128) * 4
    needed = 2 * x_blk + 2 * tgt_blk + acc_pad + (2 << 20)
    vmem_limit = int(min(max(needed + (4 << 20), 32 << 20), vmem_cap))

    partials = pl.pallas_call(
        _mtce_kernel,
        out_shape=jax.ShapeDtypeStruct((N // bn, 1), jnp.float32),
        grid_spec=pltpu.PrefetchScalarGridSpec(
            num_scalar_prefetch=0,
            grid=grid,
            in_specs=[
                # x streamed per (batch-block, T-tile); full class row per block.
                pl.BlockSpec((bn, tt, C), lambda bi, ti: (bi, ti, 0)),
                # per-batch-block targets; constant over ti -> DMA'd once per block.
                pl.BlockSpec((bn, 1, T), lambda bi, ti: (bi, 0, 0)),
            ],
            out_specs=pl.BlockSpec((1, 1), lambda bi, ti: (bi, 0)),
            scratch_shapes=[pltpu.VMEM((bn, tt), jnp.float32)],
        ),
        compiler_params=pltpu.CompilerParams(
            dimension_semantics=("parallel", "arbitrary"),
            vmem_limit_bytes=vmem_limit,
        ),
    )(x, tgt3)

    # Final mean / negate in the wrapper (lets the batch axis stay "parallel").
    return -jnp.sum(partials) / float(N * C)


def _reference(x, target):
    # Pure-JAX reference with identical PyTorch semantics (computed in f32).
    xf = x.astype(jnp.float32)
    lsm = jax.nn.log_softmax(xf, axis=2)                       # (N, T, C)
    idx = target.astype(jnp.int32)[:, None, :]                 # (N, 1, C); T == C
    picked = jnp.take_along_axis(lsm, idx, axis=1)[:, 0, :]    # (N, C)
    return -jnp.mean(picked)


def _check(x, target, **kw):
    loss = multi_target_cross_entropy(x, target, **kw)
    jax.block_until_ready(loss)
    ref = _reference(x, target)
    assert jnp.allclose(loss, ref, rtol=1e-5, atol=1e-4), (loss, ref)


if __name__ == "__main__":
    key = jax.random.PRNGKey(0)
    k1, k2, k3, k4, k5, k6 = jax.random.split(key, 6)

    # 1) Small module-consistent shape (requires T == C); single-block path.
    N, T, C = 4, 16, 16
    x = jax.random.normal(k1, (N, T, C), dtype=jnp.float32)
    target = jax.random.randint(k2, (N, T), 0, T, dtype=jnp.int32)
    _check(x, target)

    # 2) Multi-step accumulation + parallel batch axis: forced small tile budget
    #    -> BN=1, TT=64, grid=(2, 2).
    N2, T2, C2 = 2, 128, 128
    x2 = jax.random.normal(k3, (N2, T2, C2), dtype=jnp.float32)
    target2 = jax.random.randint(k4, (N2, T2), 0, T2, dtype=jnp.int32)
    _check(x2, target2, block_bytes=64 * C2 * 4)

    # 3) bf16 input exercising the dtype-aware (16-row) tile alignment + in-kernel upcast.
    N3, T3, C3 = 2, 64, 64
    x3 = jax.random.normal(k5, (N3, T3, C3), dtype=jnp.float32).astype(jnp.bfloat16)
    target3 = jax.random.randint(k6, (N3, T3), 0, T3, dtype=jnp.int32)
    _check(x3, target3, block_bytes=32 * C3 * 2)

    print("KERNEL_OK")
</pallas_src>

<mosaic_0001>
module attributes {stable_mosaic.version = 11 : i64} {
  func.func @_mtce_kernel(%arg0: i32, %arg1: i32, %arg2: memref<4x16x16xf32, #tpu.memory_space<vmem>>, %arg3: memref<4x1x16xi32, #tpu.memory_space<vmem>>, %arg4: memref<1x1xf32, #tpu.memory_space<vmem>>, %arg5: memref<4x16xf32, #tpu.memory_space<vmem>>) attributes {dimension_semantics = [#tpu.dimension_semantics<parallel>, #tpu.dimension_semantics<arbitrary>], iteration_bounds = array<i64: 1, 1>, scalar_prefetch = 0 : i64, scratch_operands = 1 : i64, tpu.core_type = #tpu.core_type<tc>, window_params = [{transform_indices = @transform_0, window_bounds = array<i64: 4, 16, 16>}, {transform_indices = @transform_1, window_bounds = array<i64: 4, 1, 16>}, {transform_indices = @transform_2, window_bounds = array<i64: 1, 1>}]} {
    %c0_i32 = arith.constant 0 : i32
    %0 = arith.cmpi eq, %arg1, %c0_i32 : i32
    %1 = arith.extui %0 : i1 to i32
    %c0_i32_0 = arith.constant 0 : i32
    %2 = arith.cmpi ne, %1, %c0_i32_0 : i32
    scf.if %2 {
      %cst_16 = arith.constant 0.000000e+00 : f32
      %39 = vector.broadcast %cst_16 : f32 to vector<4x16xf32>
      %c0_17 = arith.constant 0 : index
      %c0_18 = arith.constant 0 : index
      %40 = vector.load %arg5[%c0_17, %c0_18] : memref<4x16xf32, #tpu.memory_space<vmem>>, vector<4x16xf32>
      tpu.vector_store %arg5[%c0_17, %c0_18], %39 {strides = array<i32>} : memref<4x16xf32, #tpu.memory_space<vmem>>, vector<4x16xf32>,
    } else {
    }
    %c0 = arith.constant 0 : index
    %c0_1 = arith.constant 0 : index
    %c0_2 = arith.constant 0 : index
    %3 = vector.load %arg2[%c0, %c0_1, %c0_2] : memref<4x16x16xf32, #tpu.memory_space<vmem>>, vector<4x16x16xf32>
    %cst = arith.constant dense<0xFF800000> : vector<4x16xf32>
    %4 = vector.multi_reduction <maximumf>, %3, %cst [2] : vector<4x16x16xf32> to vector<4x16xf32>
    %5 = vector.shape_cast %4 : vector<4x16xf32> to vector<4x16x1xf32>
    %6 = vector.broadcast %5 : vector<4x16x1xf32> to vector<4x16x16xf32>
    %7 = arith.subf %3, %6 : vector<4x16x16xf32>
    %8 = math.exp %7 : vector<4x16x16xf32>
    %cst_3 = arith.constant dense<0.000000e+00> : vector<4x16xf32>
    %9 = vector.multi_reduction <add>, %8, %cst_3 [2] : vector<4x16x16xf32> to vector<4x16xf32>
    %10 = vector.shape_cast %9 : vector<4x16xf32> to vector<4x16x1xf32>
    %11 = math.log %10 : vector<4x16x1xf32>
    %12 = arith.addf %11, %5 : vector<4x16x1xf32>
    %c0_4 = arith.constant 0 : index
    %c0_5 = arith.constant 0 : index
    %c0_6 = arith.constant 0 : index
    %13 = vector.load %arg3[%c0_4, %c0_5, %c0_6] : memref<4x1x16xi32, #tpu.memory_space<vmem>>, vector<4x1x16xi32>
    %14 = tpu.iota {dimensions = array<i32: 0>} : vector<16x16xi32>
    %c16_i32 = arith.constant 16 : i32
    %15 = arith.muli %arg1, %c16_i32 : i32
    %16 = vector.broadcast %15 : i32 to vector<16x16xi32>
    %17 = arith.addi %14, %16 : vector<16x16xi32>
    %18 = vector.shape_cast %17 : vector<16x16xi32> to vector<1x16x16xi32>
    %19 = vector.broadcast %18 : vector<1x16x16xi32> to vector<4x16x16xi32>
    %20 = vector.broadcast %13 : vector<4x1x16xi32> to vector<4x16x16xi32>
    %21 = arith.cmpi eq, %19, %20 : vector<4x16x16xi32>
    %cst_7 = arith.constant 0.000000e+00 : f32
    %22 = vector.broadcast %cst_7 : f32 to vector<4x16x16xf32>
    %23 = arith.select %21, %3, %22 : vector<4x16x16xi1>, vector<4x16x16xf32>
    %cst_8 = arith.constant dense<0.000000e+00> : vector<4x16xf32>
    %24 = vector.multi_reduction <add>, %23, %cst_8 [2] : vector<4x16x16xf32> to vector<4x16xf32>
    %25 = vector.shape_cast %24 : vector<4x16xf32> to vector<4x16x1xf32>
    %26 = arith.extui %21 : vector<4x16x16xi1> to vector<4x16x16xi32>
    %27 = arith.sitofp %26 : vector<4x16x16xi32> to vector<4x16x16xf32>
    %cst_9 = arith.constant dense<0.000000e+00> : vector<4x16xf32>
    %28 = vector.multi_reduction <add>, %27, %cst_9 [2] : vector<4x16x16xf32> to vector<4x16xf32>
    %29 = vector.shape_cast %28 : vector<4x16xf32> to vector<4x16x1xf32>
    %c0_10 = arith.constant 0 : index
    %c0_11 = arith.constant 0 : index
    %30 = vector.load %arg5[%c0_10, %c0_11] : memref<4x16xf32, #tpu.memory_space<vmem>>, vector<4x16xf32>
    %31 = arith.mulf %29, %12 : vector<4x16x1xf32>
    %32 = arith.subf %25, %31 : vector<4x16x1xf32>
    %33 = vector.shape_cast %32 : vector<4x16x1xf32> to vector<4x16xf32>
    %34 = arith.addf %30, %33 : vector<4x16xf32>
    %c0_12 = arith.constant 0 : index
    %c0_13 = arith.constant 0 : index
    %35 = vector.load %arg5[%c0_12, %c0_13] : memref<4x16xf32, #tpu.memory_space<vmem>>, vector<4x16xf32>
    tpu.vector_store %arg5[%c0_12, %c0_13], %34 {strides = array<i32>} : memref<4x16xf32, #tpu.memory_space<vmem>>, vector<4x16xf32>,
    %c0_i32_14 = arith.constant 0 : i32
    %36 = arith.cmpi eq, %arg1, %c0_i32_14 : i32
    %37 = arith.extui %36 : i1 to i32
    %c0_i32_15 = arith.constant 0 : i32
    %38 = arith.cmpi ne, %37, %c0_i32_15 : i32
    scf.if %38 {
      %c0_16 = arith.constant 0 : index
      %c0_17 = arith.constant 0 : index
      %39 = vector.load %arg5[%c0_16, %c0_17] : memref<4x16xf32, #tpu.memory_space<vmem>>, vector<4x16xf32>
      %40 = vector.shape_cast %39 : vector<4x16xf32> to vector<1x4x16xf32>
      %cst_18 = arith.constant dense<0.000000e+00> : vector<1xf32>
      %41 = vector.multi_reduction <add>, %40, %cst_18 [1, 2] : vector<1x4x16xf32> to vector<1xf32>
      %42 = vector.shape_cast %41 : vector<1xf32> to vector<1x1x1xf32>
      %43 = vector.extract %42[0, 0, 0] : f32 from vector<1x1x1xf32>
      %44 = vector.broadcast %43 : f32 to vector<1x1xf32>
      %c0_19 = arith.constant 0 : index
      %c0_20 = arith.constant 0 : index
      %45 = vector.load %arg4[%c0_19, %c0_20] : memref<1x1xf32, #tpu.memory_space<vmem>>, vector<1x1xf32>
      tpu.vector_store %arg4[%c0_19, %c0_20], %44 {strides = array<i32>} : memref<1x1xf32, #tpu.memory_space<vmem>>, vector<1x1xf32>,
    } else {
    }
    return
  }
  func.func @transform_0(%arg0: i32, %arg1: i32) -> (i32, i32, i32) {
    %c0_i32 = arith.constant 0 : i32
    %c0_i32_0 = arith.constant 0 : i32
    return %arg0, %arg1, %c0_i32 : i32, i32, i32
  }
  func.func @transform_1(%arg0: i32, %arg1: i32) -> (i32, i32, i32) {
    %c0_i32 = arith.constant 0 : i32
    %c0_i32_0 = arith.constant 0 : i32
    %c0_i32_1 = arith.constant 0 : i32
    return %arg0, %c0_i32, %c0_i32_0 : i32, i32, i32
  }
  func.func @transform_2(%arg0: i32, %arg1: i32) -> (i32, i32) {
    %c0_i32 = arith.constant 0 : i32
    %c0_i32_0 = arith.constant 0 : i32
    return %arg0, %c0_i32 : i32, i32
  }
}

</mosaic_0001>

<bundles_post_ra>
// kernel: tpu_custom_call.1
= control target key start
LH: loop header
LB: loop body
LE: loop exit
PB: predicated region body
PF: predicated region fallthrough
CT: control target
= control target key end

     0   :  { %7 = vsyncpa [#allocation4], 0  ;;  %s711_s0 = inlined_call_operand.hbm [shape: f32[4,16,16], index: 0, kind: input, shape index: {}]   ;;  %s712_s1 = inlined_call_operand.hbm [shape: s32[4,1,16], index: 1, kind: input, shape index: {}]   ;;  %s713_s2 = inlined_call_operand.hbm [shape: f32[1,1], index: 2, kind: output, shape index: {}]  }
   0x1   :  { %8 = vsyncpa [#allocation7], 0 }
   0x2   :  { %9 = vsyncpa [#allocation5], 0  ;;  %s486_s9 = smov [#allocation3]  }
   0x3   :  { %s15_s10 = sshll.u32 %s486_s9, 4  ;;  %s16_s10 = int_to_ptr.vmem [resolvable:$true] %s15_s10 }
   0x4   :  { %s428_s11 = scalar_lea.vmem %s16_s10, 1024  ;;  %p433_p1 = scmp.lt.s32.totalorder %s16_s10, %s16_s10 }
   0x5   :  { %p429_p0 = scmp.ne.s32.totalorder %s16_s10, %s428_s11  ;;  %p434_p2 = scmp.lt.s32.totalorder %s428_s11, %s428_s11 }
   0x7   :  { %p435_p3 = por %p434_p2, %p433_p1 }
   0x9   :  { %p436_p4 = pnand %p435_p3, %p429_p0 }
   0xb   :  { %439 = shalt.err (!%p436_p4)
}
   0xc   :  { %s487_s12 = smov 128   ;;  %s488_s13 = smov 8  }
   0xd   :  { %21 = dma.hbm_to_vmem [thread:$0]  %s711_s0, 1024, %s16_s10, [#allocation4], %s487_s12, %s487_s12, %s488_s13  }
   0xe   :  { %s489_s16 = smov [#allocation6]  }
   0xf   :  { %s27_s17 = sshll.u32 %s489_s16, 4  ;;  %s28_s17 = int_to_ptr.vmem [resolvable:$true] %s27_s17 }
  0x10   :  { %s448_s18 = scalar_lea.vmem %s28_s17, 64  ;;  %p453_p6 = scmp.lt.s32.totalorder %s28_s17, %s28_s17 }
  0x11   :  { %p449_p5 = scmp.ne.s32.totalorder %s28_s17, %s448_s18  ;;  %p454_p7 = scmp.lt.s32.totalorder %s448_s18, %s448_s18 }
  0x13   :  { %p455_p8 = por %p454_p7, %p453_p6 }
  0x15   :  { %p456_p9 = pnand %p455_p8, %p449_p5 }
  0x17   :  { %459 = shalt.err (!%p456_p9)
}
  0x18   :  { %s490_s19 = smov 16   ;;  %s491_s20 = smov 1  }
  0x19   :  { %33 = dma.hbm_to_vmem [thread:$0]  %s712_s1, 64, %s28_s17, [#allocation7], %s490_s19, %s490_s19, %s491_s20  }
  0x1a   :  { %480 = dma.done.wait [#allocation4], 1024  }
  0x1b   :  { %481 = vsyncadd [#allocation4], 4294966272 }
  0x1c   :  { %482 = dma.done.wait [#allocation7], 64  }
  0x1d   :  { %483 = vsyncadd [#allocation7], 4294967232  ;;  %vm54_vm0 = vcmask 130048   ;;  %v515_v0 = vld [vmem:[#allocation3] sm:$0xff]  ;;  %v517_v1 = vld [vmem:[#allocation3 + $0x10] sm:$0xff]  ;;  %v155_v16 = vlaneseq  ;;  %v492_v19 = vmov 0.0  }
  0x1e   :  { %v519_v2 = vld [vmem:[#allocation3 + $0x8] sm:$0xff]  ;;  %v55_v3 = vsel %vm54_vm0, %v515_v0, -inf  ;;  %v61_v4 = vsel %vm54_vm0, %v517_v1, -inf  ;;  %v525_v5 = vld [vmem:[#allocation3 + $0x18] sm:$0xff]  ;;  %v531_v8 = vld [vmem:[#allocation3 + $0x20] sm:$0xff]  ;;  %vm44_vm9 = vcmask 125952  }
  0x1f   :  { %56 = vmax.xlane.f32.xlu0 %v55_v3  ;;  %62 = vmax.xlane.f32.xlu1 %v61_v4  ;;  %v58_v6 = vsel %vm54_vm0, %v519_v2, -inf  ;;  %v64_v7 = vsel %vm54_vm0, %v525_v5, -inf  ;;  %v533_v9 = vld [vmem:[#allocation3 + $0x28] sm:$0xff]  ;;  %v67_v10 = vsel %vm54_vm0, %v531_v8, -inf  ;;  %v539_v12 = vld [vmem:[#allocation3 + $0x30] sm:$0xff]  ;;  %v541_v13 = vld [vmem:[#allocation3 + $0x38] sm:$0xff] }
  0x20   :  { %v70_v11 = vsel %vm54_vm0, %v533_v9, -inf  ;;  %v73_v14 = vsel %vm54_vm0, %v539_v12, -inf  ;;  %v76_v15 = vsel %vm54_vm0, %v541_v13, -inf  ;;  %v548_v17 = vshrl.u32 %v155_v16, 7  ;;  %v550_v18 = vld [vmem:[#allocation6] ss:$0 sm:$0xff] }
  0x21   :  { %v562_v23 = vld [vmem:[#allocation6 + $0x1] ss:$0 sm:$0xff]  ;;  %v578_v28 = vld [vmem:[#allocation6 + $0x2] ss:$0 sm:$0xff]  ;;  %45 = vst.msk [vmem:[#allocation2] sm:$0xf] %vm44_vm9, %v492_v19 }
  0x22   :  { %vm178_vm1 = vcmp.eq.s32.totalorder %v548_v17, %v550_v18  ;;  %v560_v22 = vadd.s32 8, %v548_v17  ;;  %vm180_vm3 = vcmp.eq.s32.totalorder %v548_v17, %v562_v23  ;;  %vm182_vm5 = vcmp.eq.s32.totalorder %v548_v17, %v578_v28  ;;  %s493_s0 = smov [#allocation8]  }
  0x23   :  { %59 = vmax.xlane.f32.xlu0 %v58_v6  ;;  %65 = vmax.xlane.f32.xlu1 %v64_v7  ;;  %v370_v20 = vsel %vm178_vm1, 1.0, %v492_v19  ;;  %v372_v25 = vsel %vm180_vm3, 1.0, %v492_v19  ;;  %v374_v30 = vsel %vm182_vm5, 1.0, %v492_v19  ;;  %vm294_vm10 = vcmask 130112   ;;  %s356_s1 = sshll.u32 %s493_s0, 4  ;;  %s357_s1 = int_to_ptr.vmem [resolvable:$true] %s356_s1 }
  0x24   :  { %v234_v21 = vsel %vm54_vm0, %v370_v20, 0.0  ;;  %vm179_vm2 = vcmp.eq.s32.totalorder %v560_v22, %v550_v18  ;;  %v240_v27 = vsel %vm54_vm0, %v372_v25, 0.0  ;;  %vm181_vm4 = vcmp.eq.s32.totalorder %v560_v22, %v562_v23  ;;  %v369_v25 = vld [vmem:[#allocation6 + $0x3] ss:$0 sm:$0xff]  ;;  %s460_s24 = scalar_lea.vmem %s357_s1, 16  ;;  %s464_s25 = scalar_lea.vmem %s357_s1, 32 }
  0x25   :  { %v371_v24 = vsel %vm179_vm2, 1.0, %v492_v19  ;;  %v373_v29 = vsel %vm181_vm4, 1.0, %v492_v19  ;;  %v246_v32 = vsel %vm54_vm0, %v374_v30, 0.0  ;;  %vm183_vm6 = vcmp.eq.s32.totalorder %v560_v22, %v578_v28  ;;  %p461_p10 = scmp.ne.s32.totalorder %s357_s1, %s460_s24  ;;  %p465_p11 = scmp.lt.s32.totalorder %s357_s1, %s357_s1 }
  0x26   :  { %v237_v26 = vsel %vm54_vm0, %v371_v24, 0.0  ;;  %v243_v31 = vsel %vm54_vm0, %v373_v29, 0.0  ;;  %v375_v33 = vsel %vm183_vm6, 1.0, %v492_v19  ;;  %v186_v20 = vsel %vm178_vm1, %v515_v0, 0.0  ;;  %p466_p12 = scmp.lt.s32.totalorder %s464_s25, %s460_s24 }
  0x27   :  { %68 = vmax.xlane.f32.xlu0 %v67_v10  ;;  %71 = vmax.xlane.f32.xlu1 %v70_v11  ;;  %v249_v34 = vsel %vm54_vm0, %v375_v33, 0.0  ;;  %v187_v29 = vsel %vm179_vm2, %v519_v2, 0.0  ;;  %vm184_vm7 = vcmp.eq.s32.totalorder %v548_v17, %v369_v25  ;;  %vm185_vm8 = vcmp.eq.s32.totalorder %v560_v22, %v369_v25 }
  0x28   :  { %v197_v30 = vsel %vm54_vm0, %v187_v29, 0.0  ;;  %v377_v33 = vsel %vm185_vm8, 1.0, %v492_v19  ;;  %vm323_vm11 = vcmask 1041409   ;;  %vm325_vm12 = vcmask 1042434   ;;  %p467_p13 = por %p466_p12, %p465_p11 }
  0x29   :  { %v255_v23 = vsel %vm54_vm0, %v377_v33, 0.0  ;;  %vm327_vm13 = vcmask 1043459   ;;  %vm348_vm14 = vcmask 0  }
  0x2a   :  { %p468_p0 = pnand %p467_p13, %p461_p10 }
  0x2b   :  { %74 = vmax.xlane.f32.xlu0 %v73_v14  ;;  %77 = vmax.xlane.f32.xlu1 %v76_v15 }
  0x2f   :  { %235 = vadd.xlane.f32.xlu0 %v234_v21  ;;  %238 = vadd.xlane.f32.xlu1 %v237_v26 }
  0x33   :  { %241 = vadd.xlane.f32.xlu0 %v240_v27  ;;  %244 = vadd.xlane.f32.xlu1 %v243_v31  ;;  %v194_v27 = vsel %vm54_vm0, %v186_v20, 0.0 }
  0x37   :  { %247 = vadd.xlane.f32.xlu0 %v246_v32  ;;  %250 = vadd.xlane.f32.xlu1 %v249_v34  ;;  %v189_v32 = vsel %vm181_vm4, %v525_v5, 0.0 }
  0xa8   :  { %v601_v35 = vpop.xlane.xlu0 %56  ;;  %v603_v36 = vpop.xlane.xlu1 %62 }
  0xa9   :  { %v79_v37 = vsub.f32 %v515_v0, %v601_v35  ;;  %v81_v38 = vsub.f32 %v517_v1, %v603_v36  ;;  %v188_v0 = vsel %vm180_vm3, %v517_v1, 0.0  ;;  %v203_v1 = vsel %vm54_vm0, %v189_v32, 0.0 }
  0xaa   :  { %v200_v31 = vsel %vm54_vm0, %v188_v0, 0.0 }
  0xab   :  { %v87_v39 = vmul.f32 1.442695, %v79_v37  ;;  %v91_v40 = vmul.f32 1.442695, %v81_v38  ;;  %v191_v37 = vsel %vm183_vm6, %v533_v9, 0.0  ;;  %v192_v38 = vsel %vm184_vm7, %v539_v12, 0.0 }
  0xac   :  { %v609_v41 = vpop.xlane.xlu0 %59  ;;  %v611_v42 = vpop.xlane.xlu1 %65 }
  0xad   :  { %388 = vpow2.f32 %v87_v39  ;;  %v80_v43 = vsub.f32 %v519_v2, %v609_v41  ;;  %v82_v44 = vsub.f32 %v525_v5, %v611_v42  ;;  %v376_v2 = vsel %vm184_vm7, 1.0, %v492_v19 }
  0xae   :  { %390 = vpow2.f32 %v91_v40  ;;  %v252_v18 = vsel %vm54_vm0, %v376_v2, 0.0  ;;  %v190_v5 = vsel %vm182_vm5, %v531_v8, 0.0  ;;  %v209_v39 = vsel %vm54_vm0, %v191_v37, 0.0 }
  0xaf   :  { %v89_v45 = vmul.f32 1.442695, %v80_v43  ;;  %v93_v46 = vmul.f32 1.442695, %v82_v44  ;;  %v206_v34 = vsel %vm54_vm0, %v190_v5, 0.0  ;;  %v193_v40 = vsel %vm185_vm8, %v541_v13, 0.0 }
  0xb0   :  { %v617_v47 = vpop.xlane.xlu0 %68  ;;  %v619_v48 = vpop.xlane.xlu1 %71  ;;  %v215_v43 = vsel %vm54_vm0, %v193_v40, 0.0 }
  0xb1   :  { %392 = vpow2.f32 %v89_v45  ;;  %v83_v49 = vsub.f32 %v531_v8, %v617_v47  ;;  %v84_v50 = vsub.f32 %v533_v9, %v619_v48  ;;  %v212_v8 = vsel %vm54_vm0, %v192_v38, 0.0 }
  0xb2   :  { %394 = vpow2.f32 %v93_v46 }
  0xb3   :  { %v95_v51 = vmul.f32 1.442695, %v83_v49  ;;  %v97_v52 = vmul.f32 1.442695, %v84_v50 }
  0xb4   :  { %v625_v53 = vpop.xlane.xlu0 %74  ;;  %v627_v54 = vpop.xlane.xlu1 %77 }
  0xb5   :  { %396 = vpow2.f32 %v95_v51  ;;  %v85_v55 = vsub.f32 %v539_v12, %v625_v53  ;;  %v86_v56 = vsub.f32 %v541_v13, %v627_v54 }
  0xb6   :  { %398 = vpow2.f32 %v97_v52 }
  0xb7   :  { %v99_v57 = vmul.f32 1.442695, %v85_v55  ;;  %v101_v58 = vmul.f32 1.442695, %v86_v56 }
  0xb8   :  { %v236_v9 = vpop.xlane.xlu0 %235  ;;  %v239_v12 = vpop.xlane.xlu1 %238 }
  0xb9   :  { %400 = vpow2.f32 %v99_v57 }
  0xba   :  { %v389_v59 = vpop.eup %388  ;;  %402 = vpow2.f32 %v101_v58 }
  0xbb   :  { %v391_v60 = vpop.eup %390  ;;  %v103_v61 = vsel %vm54_vm0, %v389_v59, 0.0 }
  0xbc   :  { %104 = vadd.xlane.f32.xlu0 %v103_v61  ;;  %v109_v62 = vsel %vm54_vm0, %v391_v60, 0.0  ;;  %v242_v28 = vpop.xlane.xlu0 %241  ;;  %v245_v44 = vpop.xlane.xlu1 %244 }
  0xbe   :  { %v393_v63 = vpop.eup %392 }
  0xbf   :  { %v395_v3 = vpop.eup %394  ;;  %v106_v4 = vsel %vm54_vm0, %v393_v63, 0.0 }
  0xc0   :  { %110 = vadd.xlane.f32.xlu0 %v109_v62  ;;  %107 = vadd.xlane.f32.xlu1 %v106_v4  ;;  %v112_v6 = vsel %vm54_vm0, %v395_v3, 0.0  ;;  %v248_v45 = vpop.xlane.xlu0 %247  ;;  %v251_v46 = vpop.xlane.xlu1 %250 }
  0xc2   :  { %v397_v7 = vpop.eup %396 }
  0xc3   :  { %v399_v10 = vpop.eup %398  ;;  %v115_v11 = vsel %vm54_vm0, %v397_v7, 0.0 }
  0xc4   :  { %113 = vadd.xlane.f32.xlu1 %v112_v6  ;;  %116 = vadd.xlane.f32.xlu0 %v115_v11  ;;  %v118_v14 = vsel %vm54_vm0, %v399_v10, 0.0 }
  0xc6   :  { %v401_v15 = vpop.eup %400 }
  0xc7   :  { %v403_v21 = vpop.eup %402  ;;  %v121_v24 = vsel %vm54_vm0, %v401_v15, 0.0  ;;  %v284_v15 = vand.u32 127, %v155_v16 }
  0xc8   :  { %119 = vadd.xlane.f32.xlu1 %v118_v14  ;;  %122 = vadd.xlane.f32.xlu0 %v121_v24  ;;  %v124_v26 = vsel %vm54_vm0, %v403_v21, 0.0 }
  0xc9   :  { %v289_v29 = vadd.s32 4294967288, %v284_v15 }
  0xcc   :  { %125 = vadd.xlane.f32.xlu1 %v124_v26  ;;  %195 = vadd.xlane.f32.xlu0 %v194_v27 }
  0xd0   :  { %198 = vadd.xlane.f32.xlu1 %v197_v30  ;;  %201 = vadd.xlane.f32.xlu0 %v200_v31 }
  0xd4   :  { %204 = vadd.xlane.f32.xlu1 %v203_v1  ;;  %253 = vadd.xlane.f32.xlu0 %v252_v18 }
  0xd8   :  { %256 = vadd.xlane.f32.xlu1 %v255_v23  ;;  %207 = vadd.xlane.f32.xlu0 %v206_v34 }
  0xdc   :  { %210 = vadd.xlane.f32.xlu1 %v209_v39  ;;  %213 = vadd.xlane.f32.xlu0 %v212_v8  ;;  %v287_v39 = vsub.s32 %v284_v15, %v548_v17 }
  0xe0   :  { %216 = vadd.xlane.f32.xlu1 %v215_v43 }
 0x145   :  { %v105_v49 = vpop.xlane.xlu0 %104 }
 0x146   :  { %404 = vlog2.f32 %v105_v49 }
 0x149   :  { %v108_v50 = vpop.xlane.xlu1 %107  ;;  %v111_v22 = vpop.xlane.xlu0 %110 }
 0x14a   :  { %406 = vlog2.f32 %v108_v50 }
 0x14b   :  { %408 = vlog2.f32 %v111_v22 }
 0x14d   :  { %v114_v13 = vpop.xlane.xlu1 %113  ;;  %v117_v51 = vpop.xlane.xlu0 %116 }
 0x14e   :  { %410 = vlog2.f32 %v114_v13 }
 0x14f   :  { %412 = vlog2.f32 %v117_v51 }
 0x151   :  { %v120_v52 = vpop.xlane.xlu1 %119  ;;  %v123_v55 = vpop.xlane.xlu0 %122 }
 0x152   :  { %414 = vlog2.f32 %v120_v52 }
 0x153   :  { %416 = vlog2.f32 %v123_v55  ;;  %v405_v57 = vpop.eup %404 }
 0x154   :  { %v128_v3 = vmul.f32 0.6931472, %v405_v57 }
 0x155   :  { %v126_v19 = vpop.xlane.xlu1 %125  ;;  %v196_v56 = vpop.xlane.xlu0 %195 }
 0x156   :  { %418 = vlog2.f32 %v126_v19  ;;  %v143_v24 = vadd.f32 %v128_v3, %v601_v35 }
 0x157   :  { %v407_v58 = vpop.eup %406 }
 0x158   :  { %v409_v59 = vpop.eup %408  ;;  %v130_v60 = vmul.f32 0.6931472, %v407_v58  ;;  %v259_v16 = vmul.f32 %v236_v9, %v143_v24  ;;  %v258_v58 = vld [vmem:[#allocation2] sm:$0xf] }
 0x159   :  { %v132_v61 = vmul.f32 0.6931472, %v409_v59  ;;  %v199_v62 = vpop.xlane.xlu1 %198  ;;  %v202_v63 = vpop.xlane.xlu0 %201 }
 0x15a   :  { %v144_v6 = vadd.f32 %v130_v60, %v609_v41 }
 0x15b   :  { %v411_v4 = vpop.eup %410  ;;  %v145_v11 = vadd.f32 %v132_v61, %v603_v36 }
 0x15c   :  { %v413_v7 = vpop.eup %412  ;;  %v134_v10 = vmul.f32 0.6931472, %v411_v4  ;;  %v260_v27 = vmul.f32 %v239_v12, %v144_v6 }
 0x15d   :  { %v136_v14 = vmul.f32 0.6931472, %v413_v7  ;;  %v205_v20 = vpop.xlane.xlu1 %204  ;;  %v254_v21 = vpop.xlane.xlu0 %253  ;;  %v261_v31 = vmul.f32 %v242_v28, %v145_v11  ;;  %v267_v28 = vsub.f32 %v196_v56, %v259_v16 }
 0x15e   :  { %v146_v25 = vadd.f32 %v134_v10, %v611_v42  ;;  %v292_v42 = vsub.s32 %v289_v29, %v548_v17  ;;  %v268_v23 = vsub.f32 %v199_v62, %v260_v27 }
 0x15f   :  { %v415_v26 = vpop.eup %414  ;;  %v147_v0 = vadd.f32 %v136_v14, %v617_v47  ;;  %v269_v47 = vsub.f32 %v202_v63, %v261_v31 }
 0x160   :  { %v417_v30 = vpop.eup %416  ;;  %v138_v41 = vmul.f32 0.6931472, %v415_v26  ;;  %v262_v32 = vmul.f32 %v245_v44, %v146_v25 }
 0x161   :  { %v140_v2 = vmul.f32 0.6931472, %v417_v30  ;;  %v257_v36 = vpop.xlane.xlu1 %256  ;;  %v263_v1 = vmul.f32 %v248_v45, %v147_v0  ;;  %v208_v18 = vpop.xlane.xlu0 %207  ;;  %v293_v45 = vrot.slane %v268_v23, %v292_v42  ;;  %v299_v49 = vrot.slane %v269_v47, %v287_v39 }
 0x162   :  { %v270_v33 = vsub.f32 %v205_v20, %v262_v32  ;;  %v148_v5 = vadd.f32 %v138_v41, %v619_v48 }
 0x163   :  { %v419_v35 = vpop.eup %418  ;;  %v149_v34 = vadd.f32 %v140_v2, %v625_v53  ;;  %v271_v40 = vsub.f32 %v208_v18, %v263_v1 }
 0x164   :  { %v142_v37 = vmul.f32 0.6931472, %v419_v35  ;;  %v264_v38 = vmul.f32 %v251_v46, %v148_v5  ;;  %v303_v9 = vrot.slane %v270_v33, %v292_v42  ;;  %v288_v46 = vrot.slane %v267_v28, %v287_v39 }
 0x165   :  { %v265_v8 = vmul.f32 %v254_v21, %v149_v34  ;;  %v211_v43 = vpop.xlane.xlu1 %210  ;;  %v214_v12 = vpop.xlane.xlu0 %213  ;;  %v308_v53 = vrot.slane %v271_v40, %v287_v39 }
 0x166   :  { %v150_v44 = vadd.f32 %v142_v37, %v627_v54  ;;  %v272_v48 = vsub.f32 %v211_v43, %v264_v38  ;;  %v304_v17 = vsel %vm294_vm10, %v303_v9, %v299_v49  ;;  %v295_v19 = vsel %vm294_vm10, %v293_v45, %v288_v46 }
 0x167   :  { %v273_v13 = vsub.f32 %v214_v12, %v265_v8  ;;  %v324_v57 = vsel %vm323_vm11, %v304_v17, %v295_v19 }
 0x168   :  { %v266_v50 = vmul.f32 %v257_v36, %v150_v44  ;;  %v312_v22 = vrot.slane %v272_v48, %v292_v42 }
 0x169   :  { %v217_v51 = vpop.xlane.xlu1 %216  ;;  %v317_v54 = vrot.slane %v273_v13, %v287_v39 }
 0x16a   :  { %v274_v52 = vsub.f32 %v217_v51, %v266_v50  ;;  %v313_v55 = vsel %vm294_vm10, %v312_v22, %v308_v53 }
 0x16b   :  { %v326_v59 = vsel %vm325_vm12, %v313_v55, %v324_v57 }
 0x16c   :  { %v321_v56 = vrot.slane %v274_v52, %v292_v42 }
 0x16e   :  { %v322_v60 = vsel %vm294_vm10, %v321_v56, %v317_v54 }
 0x16f   :  { %v328_v61 = vsel %vm327_vm13, %v322_v60, %v326_v59 }
 0x170   :  { %v330_v62 = vadd.f32 %v328_v61, %v258_v58 }
 0x172   :  { %332 = vst.msk [vmem:[#allocation2] sm:$0xf] %vm44_vm9, %v330_v62 }
 0x179   :  { %v336_v63 = vld [vmem:[#allocation2] sm:$0xf] }
 0x17a   :  { %v337_v3 = vsel %vm44_vm9, %v336_v63, 0.0 }
 0x17b   :  { %338 = vadd.xlane.f32.xlu0 %v337_v3 }
 0x204   :  { %v339_v4 = vpop.xlane.xlu0 %338 }
 0x205   :  { %v340_v6 = vrot.slane %v339_v4, 4 }
 0x207   :  { %v341_v7 = vadd.f32 %v340_v6, %v339_v4 }
 0x209   :  { %v342_v10 = vrot.slane %v341_v7, 2 }
 0x20b   :  { %v343_v11 = vadd.f32 %v342_v10, %v341_v7 }
 0x20d   :  { %v344_v14 = vrot.slane %v343_v11, 1 }
 0x20f   :  { %v345_v15 = vadd.f32 %v344_v14, %v343_v11 }
 0x211   :  { %378 = vpush %v345_v15 }
 0x242   :  { %s379_s23 = spop %378 }
 0x243   :  { %v347_v20 = vstv %s379_s23 }
 0x244   :  { %349 = vst.msk [vmem:[#allocation8] sm:$0x1] %vm348_vm14, %v347_v20 }
 0x245   :  { %471 = shalt.err (!%p468_p0)
}
 0x246   :  { %359 = dma.vmem_to_hbm [thread:$0]  %s357_s1, 16, %s713_s2, [#allocation5]  }
 0x247   :  { %484 = dma.done.wait [#allocation5], 16  }
 0x248   :  { %485 = vsyncadd [#allocation5], 4294967280 }
 0x249   :  { %363 = vsyncpa [#allocation4], 1 }
 0x24a   :  { %364 = vsyncpa [#allocation7], 1 }
 0x24b   :  { %365 = vsyncpa [#allocation5], 1 }

</bundles_post_ra>
